<compile_context>
chip_gen: v7x
topology: tpu7x:2x2x1
jax: 0.10.0
libtpu: 0.0.40
codegen_flags: <defaults>
</compile_context>

<pallas_src>
import jax
import jax.numpy as jnp
from jax.experimental import pallas as pl
from jax.experimental.pallas import tpu as pltpu

_C1 = 0.79788456
_C2 = 0.79788456 * 0.044715  # folded: 0.79788456 * (1 + 0.044715 x^2) = C1 + C2 x^2


def _bloom_gelu_kernel(x_ref, o_ref):
    # Compute in f32 for accuracy; cast back to the output dtype on store.
    xf = x_ref[...].astype(jnp.float32)
    x2 = xf * xf
    inner = xf * (_C1 + _C2 * x2)
    # jnp.tanh lowers to the EUP transcendental unit (separate VLIW slot),
    # so it is essentially free in this memory-bound kernel.
    o_ref[...] = (0.5 * xf * (1.0 + jnp.tanh(inner))).astype(o_ref.dtype)


def _bloom_gelu_jnp(x: jax.Array) -> jax.Array:
    """Plain-XLA fallback for tiny tails / inputs smaller than one lane row."""
    xf = x.astype(jnp.float32)
    x2 = xf * xf
    out = 0.5 * xf * (1.0 + jnp.tanh(xf * (_C1 + _C2 * x2)))
    return out.astype(x.dtype)


def bloom_gelu(
    x: jax.Array,
    *,
    lane_width: int = 1024,      # multiple of 128: lane-dense, unmasked vst
    block_bytes: int = 4 << 20,  # ~4 MiB (f32-equivalent) per block
) -> jax.Array:
    """Applies the Bloom tanh-approximation GELU elementwise.

    Works for any input shape; internally flattens to a lane-dense
    (rows, W) slab, tiles rows across a 1-D parallel grid, and restores the
    original shape.  No padded copy of the tensor is ever materialized.
    """
    orig_shape = x.shape
    orig_dtype = x.dtype
    total = x.size
    if total == 0:
        return x
    itemsize = jnp.dtype(orig_dtype).itemsize

    # Lane width: 1024 for large inputs, else the largest multiple of 128
    # that fits.  Anything smaller than one 128-lane row goes to plain XLA.
    W = min(lane_width, (total // 128) * 128)
    if W < 128:
        return _bloom_gelu_jnp(x)

    rows = total // W          # full-width rows -> kernel path
    tail = total - rows * W    # < W leftover elements -> tiny jnp epilogue

    x_flat = x.reshape(-1)
    x2d = x_flat[: rows * W].reshape(rows, W)

    # Sublane alignment for the row (second-to-last) block dim:
    # 8 for 32-bit, 16 for 16-bit, 32 for 8-bit dtypes.
    sub = 8 * max(1, 4 // itemsize)

    # Byte-budgeted, sublane-aligned row tile.  Budget against the f32
    # compute footprint (max(itemsize, 4)) so f32 intermediates of
    # low-precision inputs stay within the VMEM limit.
    tm = max(sub, (block_bytes // (W * max(itemsize, 4))) // sub * sub)
    # v7x megacore: keep >= 2 grid steps whenever rows allow, so the
    # "parallel" grid axis shards across both TensorCores.
    if rows >= 2 * sub:
        tm = min(tm, max(sub, (rows // 2) // sub * sub))
    # Never taller than rows rounded up to the sublane multiple.
    tm = min(tm, pl.cdiv(rows, sub) * sub)

    grid = (pl.cdiv(rows, tm),)  # ragged last block handled by Pallas masking

    out2d = pl.pallas_call(
        _bloom_gelu_kernel,
        out_shape=jax.ShapeDtypeStruct((rows, W), orig_dtype),
        grid=grid,
        in_specs=[pl.BlockSpec((tm, W), lambda i: (i, 0))],
        out_specs=pl.BlockSpec((tm, W), lambda i: (i, 0)),
        compiler_params=pltpu.CompilerParams(
            dimension_semantics=("parallel",),
            vmem_limit_bytes=48 << 20,
        ),
    )(x2d)

    out_flat = out2d.reshape(-1)
    if tail:
        out_flat = jnp.concatenate(
            [out_flat, _bloom_gelu_jnp(x_flat[rows * W:])]
        )
    return out_flat.reshape(orig_shape)


def bloom_gelu_ref(x: jax.Array) -> jax.Array:
    """Direct transcription of the PyTorch bloom_gelu_forward (spec form)."""
    xf = x.astype(jnp.float32)
    out = xf * 0.5 * (1.0 + jnp.tanh(0.79788456 * xf * (1.0 + 0.044715 * xf * xf)))
    return out.astype(x.dtype)


if __name__ == "__main__":
    key = jax.random.PRNGKey(0)

    def check(x, atol, rtol, name):
        y = jax.block_until_ready(bloom_gelu(x))
        y_ref = bloom_gelu_ref(x)
        assert y.shape == x.shape and y.dtype == x.dtype, name
        assert jnp.allclose(
            y.astype(jnp.float32), y_ref.astype(jnp.float32), atol=atol, rtol=rtol
        ), f"mismatch vs reference ({name})"

    # Bloom hidden-states layout: (batch=2, seq=8, hidden=32), f32.
    k1, k2, k3, k4, k5, k6 = jax.random.split(key, 6)
    check(jax.random.normal(k1, (2, 8, 32), dtype=jnp.float32), 1e-5, 1e-5, "small f32")

    # Multi-block grid + megacore split (rows=512, >=2 grid steps).
    check(jax.random.normal(k2, (4, 128, 1024), dtype=jnp.float32), 1e-5, 1e-5, "large f32")

    # Ragged rows: rows % tm != 0 -> masked last row-block (no padding copy).
    check(jax.random.normal(k3, (2, 300, 1024), dtype=jnp.float32), 1e-5, 1e-5, "ragged rows")

    # total % W != 0 -> kernel prefix + tiny jnp tail.
    check(jax.random.normal(k4, (5, 7, 33), dtype=jnp.float32), 1e-5, 1e-5, "lane tail")

    # Tiny input -> plain-XLA fallback path.
    check(jax.random.normal(k5, (3, 5, 7), dtype=jnp.float32), 1e-5, 1e-5, "tiny fallback")

    # bf16 inputs (compute in f32, store bf16).
    check(jax.random.normal(k6, (2, 8, 1024), dtype=jnp.bfloat16), 1e-2, 1e-2, "bf16")

    # TODO(synk): backward pass (bloom_gelu_back / GeLUFunction) not implemented; forward only.
    print("KERNEL_OK")
</pallas_src>

<mosaic_0001>
module attributes {stable_mosaic.version = 11 : i64} {
  func.func @_bloom_gelu_kernel(%arg0: i32, %arg1: memref<8x512xf32, #tpu.memory_space<vmem>>, %arg2: memref<8x512xf32, #tpu.memory_space<vmem>>) attributes {dimension_semantics = [#tpu.dimension_semantics<parallel>], iteration_bounds = array<i64: 1>, scalar_prefetch = 0 : i64, scratch_operands = 0 : i64, tpu.core_type = #tpu.core_type<tc>, window_params = [{transform_indices = @transform_0, window_bounds = array<i64: 8, 512>}, {transform_indices = @transform_1, window_bounds = array<i64: 8, 512>}]} {
    %c0 = arith.constant 0 : index
    %c0_0 = arith.constant 0 : index
    %0 = vector.load %arg1[%c0, %c0_0] : memref<8x512xf32, #tpu.memory_space<vmem>>, vector<8x512xf32>
    %1 = arith.mulf %0, %0 : vector<8x512xf32>
    %cst = arith.constant 0.0356774069 : f32
    %2 = vector.broadcast %cst : f32 to vector<8x512xf32>
    %3 = arith.mulf %2, %1 : vector<8x512xf32>
    %cst_1 = arith.constant 0.797884583 : f32
    %4 = vector.broadcast %cst_1 : f32 to vector<8x512xf32>
    %5 = arith.addf %4, %3 : vector<8x512xf32>
    %6 = arith.mulf %0, %5 : vector<8x512xf32>
    %cst_2 = arith.constant 5.000000e-01 : f32
    %7 = vector.broadcast %cst_2 : f32 to vector<8x512xf32>
    %8 = arith.mulf %7, %0 : vector<8x512xf32>
    %9 = math.tanh %6 : vector<8x512xf32>
    %cst_3 = arith.constant 1.000000e+00 : f32
    %10 = vector.broadcast %cst_3 : f32 to vector<8x512xf32>
    %11 = arith.addf %10, %9 : vector<8x512xf32>
    %12 = arith.mulf %8, %11 : vector<8x512xf32>
    %c0_4 = arith.constant 0 : index
    %c0_5 = arith.constant 0 : index
    %13 = vector.load %arg2[%c0_4, %c0_5] : memref<8x512xf32, #tpu.memory_space<vmem>>, vector<8x512xf32>
    tpu.vector_store %arg2[%c0_4, %c0_5], %12 {strides = array<i32>} : memref<8x512xf32, #tpu.memory_space<vmem>>, vector<8x512xf32>,
    return
  }
  func.func @transform_0(%arg0: i32) -> (i32, i32) {
    %c0_i32 = arith.constant 0 : i32
    %c0_i32_0 = arith.constant 0 : i32
    return %arg0, %c0_i32 : i32, i32
  }
  func.func @transform_1(%arg0: i32) -> (i32, i32) {
    %c0_i32 = arith.constant 0 : i32
    %c0_i32_0 = arith.constant 0 : i32
    return %arg0, %c0_i32 : i32, i32
  }
}

</mosaic_0001>

<bundles_post_ra>
// kernel: tpu_custom_call.1
= control target key start
LH: loop header
LB: loop body
LE: loop exit
PB: predicated region body
PF: predicated region fallthrough
CT: control target
= control target key end

     0   :  { %6 = vsyncpa [#allocation3], 0  ;;  %s256_s0 = inlined_call_operand.hbm [shape: f32[1,512], index: 0, kind: input, shape index: {}]   ;;  %s257_s1 = inlined_call_operand.hbm [shape: f32[1,512], index: 1, kind: output, shape index: {}]  }
   0x1   :  { %7 = vsyncpa [#allocation4], 0 }
   0x2   :  { %12 = vsyncadd [#allocation3], 448  ;;  %s192_s6 = smov [#allocation2]   ;;  %s144_s10 = scalar_lea.hbm %s256_s0, 64 }
   0x3   :  { %s13_s7 = sshll.u32 %s192_s6, 4  ;;  %p145_p0 = scmp.ne.s32.totalorder %s256_s0, %s144_s10  ;;  %s14_s7 = int_to_ptr.vmem [resolvable:$true] %s13_s7 }
   0x4   :  { %p148_p1 = scmp.lt.u32.totalorder %s144_s10, %s256_s0 }
   0x6   :  { %p150_p2 = pnand %p148_p1, %p145_p0 }
   0x8   :  { %153 = shalt.err (!%p150_p2)
}
   0x9   :  { %s154_s15 = scalar_lea.vmem %s14_s7, 64  ;;  %s158_s16 = scalar_lea.vmem %s14_s7, 512 }
   0xa   :  { %p155_p3 = scmp.ne.s32.totalorder %s14_s7, %s154_s15  ;;  %p159_p4 = scmp.lt.s32.totalorder %s14_s7, %s14_s7 }
   0xb   :  { %p160_p5 = scmp.lt.s32.totalorder %s158_s16, %s154_s15 }
   0xd   :  { %p161_p6 = por %p160_p5, %p159_p4 }
   0xf   :  { %p162_p7 = pnand %p161_p6, %p155_p3 }
  0x11   :  { %165 = shalt.err (!%p162_p7)
}
  0x12   :  { %s193_s17 = smov 64   ;;  %s194_s18 = smov 4  }
  0x13   :  { %19 = dma.hbm_to_vmem [thread:$0]  %s256_s0, 64, %s14_s7, [#allocation3], %s193_s17, %s193_s17, %s194_s18  }
  0x14   :  { %188 = dma.done.wait [#allocation3], 512  }
  0x15   :  { %189 = vsyncadd [#allocation3], 4294966784  ;;  %v23_v0 = vld [vmem:[#allocation2] sm:$0xf]  ;;  %v24_v1 = vld [vmem:[#allocation2 + $0x4] sm:$0xf]  ;;  %v95_v40 = vlaneseq }
  0x16   :  { %v25_v2 = vld [vmem:[#allocation2 + $0x8] sm:$0xf]  ;;  %v31_v3 = vmul.f32 %v23_v0, %v23_v0  ;;  %v32_v4 = vmul.f32 %v24_v1, %v24_v1  ;;  %v26_v5 = vld [vmem:[#allocation2 + $0xc] sm:$0xf]  ;;  %v27_v6 = vld [vmem:[#allocation2 + $0x10] sm:$0xf] }
  0x17   :  { %v33_v7 = vmul.f32 %v25_v2, %v25_v2  ;;  %v34_v8 = vmul.f32 %v26_v5, %v26_v5  ;;  %v28_v9 = vld [vmem:[#allocation2 + $0x14] sm:$0xf]  ;;  %v29_v10 = vld [vmem:[#allocation2 + $0x18] sm:$0xf]  ;;  %v35_v13 = vmul.f32 %v27_v6, %v27_v6  ;;  %v30_v28 = vld [vmem:[#allocation2 + $0x1c] sm:$0xf] }
  0x18   :  { %v39_v11 = vmul.f32 0.035677407, %v31_v3  ;;  %v40_v12 = vmul.f32 0.035677407, %v32_v4  ;;  %v36_v16 = vmul.f32 %v28_v9, %v28_v9  ;;  %v37_v20 = vmul.f32 %v29_v10, %v29_v10 }
  0x19   :  { %v41_v14 = vmul.f32 0.035677407, %v33_v7  ;;  %v42_v15 = vmul.f32 0.035677407, %v34_v8  ;;  %v43_v19 = vmul.f32 0.035677407, %v35_v13  ;;  %v38_v34 = vmul.f32 %v30_v28, %v30_v28 }
  0x1a   :  { %v47_v17 = vadd.f32 0.7978846, %v39_v11  ;;  %v48_v18 = vadd.f32 0.7978846, %v40_v12  ;;  %v44_v23 = vmul.f32 0.035677407, %v36_v16 }
  0x1b   :  { %v49_v21 = vadd.f32 0.7978846, %v41_v14  ;;  %v50_v22 = vadd.f32 0.7978846, %v42_v15  ;;  %v51_v26 = vadd.f32 0.7978846, %v43_v19 }
  0x1c   :  { %v55_v24 = vmul.f32 %v47_v17, %v23_v0  ;;  %v56_v25 = vmul.f32 %v48_v18, %v24_v1  ;;  %v45_v27 = vmul.f32 0.035677407, %v37_v20  ;;  %v52_v31 = vadd.f32 0.7978846, %v44_v23 }
  0x1d   :  { %v57_v29 = vmul.f32 %v49_v21, %v25_v2  ;;  %v58_v30 = vmul.f32 %v50_v22, %v26_v5  ;;  %v59_v32 = vmul.f32 %v51_v26, %v27_v6  ;;  %v46_v37 = vmul.f32 0.035677407, %v38_v34 }
  0x1e   :  { %128 = vtanh.f32 %v55_v24  ;;  %v53_v33 = vadd.f32 0.7978846, %v45_v27  ;;  %v60_v35 = vmul.f32 %v52_v31, %v28_v9  ;;  %v63_v41 = vmul.f32 0.5, %v23_v0 }
  0x1f   :  { %130 = vtanh.f32 %v56_v25  ;;  %v54_v38 = vadd.f32 0.7978846, %v46_v37  ;;  %v64_v43 = vmul.f32 0.5, %v24_v1  ;;  %v65_v46 = vmul.f32 0.5, %v25_v2 }
  0x20   :  { %132 = vtanh.f32 %v57_v29  ;;  %v61_v36 = vmul.f32 %v53_v33, %v29_v10  ;;  %vm221_vm0 = vcmp.lt.s32.totalorder %v95_v40, 512  ;;  %v66_v50 = vmul.f32 0.5, %v26_v5 }
  0x21   :  { %134 = vtanh.f32 %v58_v30  ;;  %v62_v39 = vmul.f32 %v54_v38, %v30_v28  ;;  %v67_v54 = vmul.f32 0.5, %v27_v6  ;;  %v68_v58 = vmul.f32 0.5, %v28_v9 }
  0x22   :  { %136 = vtanh.f32 %v59_v32  ;;  %v69_v62 = vmul.f32 0.5, %v29_v10  ;;  %v70_v4 = vmul.f32 0.5, %v30_v28 }
  0x23   :  { %138 = vtanh.f32 %v60_v35 }
  0x24   :  { %140 = vtanh.f32 %v61_v36 }
  0x25   :  { %142 = vtanh.f32 %v62_v39 }
  0x28   :  { %v129_v42 = vpop.eup %128 }
  0x29   :  { %v131_v44 = vpop.eup %130  ;;  %v79_v45 = vadd.f32 1.0, %v129_v42 }
  0x2a   :  { %v133_v47 = vpop.eup %132  ;;  %v80_v49 = vadd.f32 1.0, %v131_v44 }
  0x2b   :  { %v135_v51 = vpop.eup %134  ;;  %v87_v52 = vmul.f32 %v79_v45, %v63_v41  ;;  %v81_v53 = vadd.f32 1.0, %v133_v47 }
  0x2c   :  { %v137_v55 = vpop.eup %136  ;;  %v88_v56 = vmul.f32 %v80_v49, %v64_v43  ;;  %v82_v57 = vadd.f32 1.0, %v135_v51 }
  0x2d   :  { %v139_v59 = vpop.eup %138  ;;  %99 = vst.msk [vmem:[#allocation5] sm:$0xf] %vm221_vm0, %v87_v52  ;;  %v89_v60 = vmul.f32 %v81_v53, %v65_v46  ;;  %v83_v61 = vadd.f32 1.0, %v137_v55 }
  0x2e   :  { %v141_v63 = vpop.eup %140  ;;  %100 = vst.msk [vmem:[#allocation5 + $0x4] sm:$0xf] %vm221_vm0, %v88_v56  ;;  %v90_v0 = vmul.f32 %v82_v57, %v66_v50  ;;  %v84_v1 = vadd.f32 1.0, %v139_v59 }
  0x2f   :  { %101 = vst.msk [vmem:[#allocation5 + $0x8] sm:$0xf] %vm221_vm0, %v89_v60  ;;  %v91_v2 = vmul.f32 %v83_v61, %v67_v54  ;;  %v85_v3 = vadd.f32 1.0, %v141_v63  ;;  %v143_v5 = vpop.eup %142 }
  0x30   :  { %102 = vst.msk [vmem:[#allocation5 + $0xc] sm:$0xf] %vm221_vm0, %v90_v0  ;;  %v92_v6 = vmul.f32 %v84_v1, %v68_v58  ;;  %v86_v8 = vadd.f32 1.0, %v143_v5 }
  0x31   :  { %103 = vst.msk [vmem:[#allocation5 + $0x10] sm:$0xf] %vm221_vm0, %v91_v2  ;;  %v93_v7 = vmul.f32 %v85_v3, %v69_v62 }
  0x32   :  { %104 = vst.msk [vmem:[#allocation5 + $0x14] sm:$0xf] %vm221_vm0, %v92_v6  ;;  %v94_v9 = vmul.f32 %v86_v8, %v70_v4 }
  0x33   :  { %105 = vst.msk [vmem:[#allocation5 + $0x18] sm:$0xf] %vm221_vm0, %v93_v7 }
  0x34   :  { %106 = vst.msk [vmem:[#allocation5 + $0x1c] sm:$0xf] %vm221_vm0, %v94_v9 }
  0x35   :  { %111 = vsyncadd [#allocation4], 448  ;;  %s195_s0 = smov [#allocation5]  }
  0x36   :  { %s112_s21 = sshll.u32 %s195_s0, 4  ;;  %s113_s21 = int_to_ptr.vmem [resolvable:$true] %s112_s21 }
  0x37   :  { %s166_s22 = scalar_lea.vmem %s113_s21, 64  ;;  %s170_s23 = scalar_lea.vmem %s113_s21, 512 }
  0x38   :  { %p167_p8 = scmp.ne.s32.totalorder %s113_s21, %s166_s22  ;;  %p171_p9 = scmp.lt.s32.totalorder %s113_s21, %s113_s21 }
  0x39   :  { %p172_p10 = scmp.lt.s32.totalorder %s170_s23, %s166_s22 }
  0x3b   :  { %p173_p11 = por %p172_p10, %p171_p9 }
  0x3d   :  { %p174_p12 = pnand %p173_p11, %p167_p8 }
  0x3f   :  { %177 = shalt.err (!%p174_p12)
}
  0x40   :  { %s178_s26 = scalar_lea.hbm %s257_s1, 64 }
  0x41   :  { %p179_p13 = scmp.ne.s32.totalorder %s257_s1, %s178_s26  ;;  %p182_p0 = scmp.lt.u32.totalorder %s178_s26, %s257_s1 }
  0x43   :  { %p184_p1 = pnand %p182_p0, %p179_p13 }
  0x45   :  { %187 = shalt.err (!%p184_p1)
}
  0x46   :  { %118 = dma.vmem_to_hbm [thread:$0]  %s113_s21, 64, %s257_s1, [#allocation4], %s193_s17, %s193_s17, %s194_s18  }
  0x47   :  { %190 = dma.done.wait [#allocation4], 512  }
  0x48   :  { %191 = vsyncadd [#allocation4], 4294966784 }
  0x49   :  { %122 = vsyncpa [#allocation3], 1 }
  0x4a   :  { %123 = vsyncpa [#allocation4], 1 }

</bundles_post_ra>
